<compile_context>
chip_gen: v7x
topology: tpu7x:2x2x1
jax: 0.10.0
libtpu: 0.0.40
codegen_flags: <defaults>
</compile_context>

<pallas_src>
import functools

import jax
import jax.numpy as jnp
from jax import lax
from jax.experimental import pallas as pl
from jax.experimental.pallas import tpu as pltpu


def _round_up(x, m):
    return (x + m - 1) // m * m


def _vmem_capacity_bytes():
    # Generation-aware physical VMEM; conservative fallback off-TPU / interpret.
    try:
        return int(pltpu.get_tpu_info().vmem_capacity_bytes)
    except Exception:
        return 64 << 20


def _ffn_kernel(seed_ref, x_ref, w1_ref, b1_ref, w2_ref, b2_ref, o_ref, acc_ref,
                *, negative_slope, drop_rate, training, tm, th):
    j = pl.program_id(1)

    @pl.when(j == 0)
    def _():
        acc_ref[...] = jnp.zeros_like(acc_ref)

    # linear1 (chunk j of the hidden dim): bf16 operands, f32 accumulation on MXU.
    h = jnp.dot(x_ref[...].astype(jnp.bfloat16), w1_ref[...],
                preferred_element_type=jnp.float32)
    h = h + b1_ref[...]

    # LeakyReLU(negative_slope) in f32.
    h = jnp.where(h > 0, h, negative_slope * h)

    # Dropout (inverted scaling). Counter-based hash PRNG keyed on the *global*
    # (token, hidden) coordinate plus the runtime seed, so the mask does not depend
    # on tiling and lowers everywhere (no TPU-only PRNG primitives).
    # TODO(synk): same distribution as torch dropout, but not bit-identical to
    # torch's RNG stream; caller should vary `seed` per training step.
    if training and drop_rate > 0.0:
        keep_prob = 1.0 - drop_rate
        i = pl.program_id(0)
        row = (lax.broadcasted_iota(jnp.int32, h.shape, 0) + i * tm).astype(jnp.uint32)
        col = (lax.broadcasted_iota(jnp.int32, h.shape, 1) + j * th).astype(jnp.uint32)
        seed = seed_ref[0].astype(jnp.uint32)
        z = (row * jnp.uint32(0x9E3779B1)
             ^ (col * jnp.uint32(0x85EBCA77))
             ^ (seed * jnp.uint32(0xC2B2AE3D) + jnp.uint32(0x27D4EB2F)))
        # murmur3 fmix32 finalizer
        z = z ^ (z >> 16)
        z = z * jnp.uint32(0x85EBCA6B)
        z = z ^ (z >> 13)
        z = z * jnp.uint32(0xC2B2AE35)
        z = z ^ (z >> 16)
        thresh = jnp.uint32(min(int(keep_prob * float(2 ** 32)), 2 ** 32 - 1))
        h = jnp.where(z < thresh, h * (1.0 / keep_prob), 0.0)

    # linear2 (chunk j): accumulate into the f32 VMEM scratch.
    acc_ref[...] += jnp.dot(h.astype(jnp.bfloat16), w2_ref[...],
                            preferred_element_type=jnp.float32)

    @pl.when(j == pl.num_programs(1) - 1)
    def _():
        o_ref[...] = (acc_ref[...] + b2_ref[...]).astype(o_ref.dtype)


def ffn_pallas(x, w1, b1, w2, b2, *, negative_slope=0.01, drop_rate=0.1,
               training=False, seed=0, block_tokens=None):
    """x: (..., Din); w1: (Din, Dh); b1: (Dh,); w2: (Dh, Dout); b2: (Dout,)."""
    orig_shape = x.shape
    d_in = orig_shape[-1]
    d_h = w1.shape[1]
    d_out = w2.shape[1]
    out_dtype = x.dtype

    x2d = x.reshape(-1, d_in)   # no padding copies; ragged last token block is masked
    n_tok = x2d.shape[0]
    x_itemsize = jnp.dtype(x.dtype).itemsize
    out_itemsize = jnp.dtype(out_dtype).itemsize

    vmem_cap = _vmem_capacity_bytes()
    vmem_budget = max(vmem_cap - (16 << 20), 32 << 20)   # headroom for compiler scratch

    if block_tokens is None:
        # Bigger token tile on 128-MiB VMEM parts (v5e/v6e); 256 on v7x (64 MiB).
        block_tokens = 512 if vmem_cap >= (96 << 20) else 256

    # Token tile: multiple of 8; split into >=2 tiles whenever possible so both
    # TensorCores get work on v7x megacore.
    if n_tok > 8:
        tm = min(block_tokens, _round_up(pl.cdiv(n_tok, 2), 8))
    else:
        tm = _round_up(max(n_tok, 1), 8)
    n_tok_tiles = pl.cdiv(n_tok, tm)

    def _vmem_bytes(th_, n_w_buf):
        # Pipelined I/O buffers + weight buffers + scratch + live intermediates
        # (f32 h, bf16 h copy, bf16 x copy, dropout bits).
        return (2 * tm * d_in * x_itemsize                    # x tile, double-buffered
                + 2 * tm * d_out * out_itemsize               # out tile, double-buffered
                + n_w_buf * (d_in * th_ + th_ * d_out) * 2    # bf16 w1/w2 chunks
                + n_w_buf * th_ * 4 + d_out * 4               # f32 biases
                + tm * d_out * 4                              # f32 accumulator scratch
                + tm * th_ * (4 + 2 + 4)                      # h f32 + h bf16 + rng bits
                + tm * d_in * 2)                              # bf16 x copy

    # Decide whether the full bf16 weights stay VMEM-resident (single chunk) or the
    # hidden dim is chunked (v7x-scale models on a 64 MiB budget).
    full_w_bytes = (d_in * d_h + d_h * d_out) * 2
    if full_w_bytes <= vmem_budget // 3 and _vmem_bytes(d_h, 1) <= vmem_budget:
        th = d_h                 # single chunk; no feature-dim padding at all
        dp_h = d_h
    else:
        th = min(1024, _round_up(d_h, 128))
        while th > 128 and _vmem_bytes(th, 2) > vmem_budget:
            th -= 128
        dp_h = _round_up(d_h, th)
    n_h_chunks = dp_h // th

    # Weight / bias preparation (small one-time casts; zero-padding of the hidden
    # dim only in the chunked path, and only on the weights/bias — never on x/out).
    w1b = w1.astype(jnp.bfloat16)
    w2b = w2.astype(jnp.bfloat16)
    b1f = b1.astype(jnp.float32).reshape(1, d_h)
    b2f = b2.astype(jnp.float32).reshape(1, d_out)
    if dp_h != d_h:
        pad = dp_h - d_h
        w1b = jnp.pad(w1b, ((0, 0), (0, pad)))
        b1f = jnp.pad(b1f, ((0, 0), (0, pad)))
        w2b = jnp.pad(w2b, ((0, pad), (0, 0)))

    seed_arr = jnp.asarray([seed], dtype=jnp.int32)

    # Single-buffer any operand whose block index never changes; weights that cycle
    # over Dh chunks keep the default double-buffering so their DMA is hidden.
    w_mode = pl.Buffered(1) if n_h_chunks == 1 else None
    b2_mode = pl.Buffered(1)

    def _spec(shape, index_map, mode=None):
        if mode is None:
            return pl.BlockSpec(shape, index_map)
        return pl.BlockSpec(shape, index_map, pipeline_mode=mode)

    vmem_need = _vmem_bytes(th, 1 if n_h_chunks == 1 else 2)
    vmem_limit = min(int(vmem_need * 1.5) + (4 << 20), vmem_budget)

    cost = pl.CostEstimate(
        flops=2 * n_tok * (d_in * d_h + d_h * d_out),
        transcendentals=0,
        bytes_accessed=int(x2d.size * x_itemsize
                           + (d_in * dp_h + dp_h * d_out) * 2
                           + (dp_h + d_out) * 4
                           + n_tok * d_out * out_itemsize),
    )

    kernel = functools.partial(
        _ffn_kernel,
        negative_slope=negative_slope,
        drop_rate=drop_rate,
        training=training,
        tm=tm,
        th=th,
    )

    out2d = pl.pallas_call(
        kernel,
        out_shape=jax.ShapeDtypeStruct((n_tok, d_out), out_dtype),
        grid_spec=pltpu.PrefetchScalarGridSpec(
            num_scalar_prefetch=1,          # dropout seed lands in SMEM
            grid=(n_tok_tiles, n_h_chunks),
            in_specs=[
                _spec((tm, d_in), lambda i, j, *_: (i, 0)),
                _spec((d_in, th), lambda i, j, *_: (0, j), w_mode),
                _spec((1, th), lambda i, j, *_: (0, j), w_mode),
                _spec((th, d_out), lambda i, j, *_: (j, 0), w_mode),
                _spec((1, d_out), lambda i, j, *_: (0, 0), b2_mode),
            ],
            out_specs=pl.BlockSpec((tm, d_out), lambda i, j, *_: (i, 0)),
            scratch_shapes=[pltpu.VMEM((tm, d_out), jnp.float32)],
        ),
        compiler_params=pltpu.CompilerParams(
            dimension_semantics=("parallel", "arbitrary"),
            vmem_limit_bytes=vmem_limit,
        ),
        cost_estimate=cost,
    )(seed_arr, x2d, w1b, b1f, w2b, b2f)

    return out2d.reshape(*orig_shape[:-1], d_out)


def _init_linear(key, fan_in, fan_out):
    # Deterministic init mirroring nn.Linear's kaiming-uniform style bounds.
    kw, kb = jax.random.split(key)
    bound = 1.0 / (fan_in ** 0.5)
    w = jax.random.uniform(kw, (fan_in, fan_out), jnp.float32, -bound, bound)
    b = jax.random.uniform(kb, (fan_out,), jnp.float32, -bound, bound)
    return w, b


def _reference_ffn(x, w1, b1, w2, b2, negative_slope=0.01):
    # Pure-JAX f32 reference (eval mode: dropout is identity).
    h = x @ w1 + b1
    h = jnp.where(h > 0, h, negative_slope * h)
    return h @ w2 + b2


if __name__ == "__main__":
    key = jax.random.PRNGKey(0)
    k_x, k_l1, k_l2 = jax.random.split(key, 3)

    batch, seq, hid = 2, 8, 32  # ffn_input_num = ffn_hidden_num = ffn_outputs_num
    x = jax.random.normal(k_x, (batch, seq, hid), jnp.float32)

    w1, b1 = _init_linear(k_l1, hid, hid)
    w2, b2 = _init_linear(k_l2, hid, hid)

    # Eval-mode forward (dropout = identity) for deterministic verification.
    out = ffn_pallas(x, w1, b1, w2, b2, training=False)
    out = jax.block_until_ready(out)

    ref = _reference_ffn(x, w1, b1, w2, b2)
    assert out.shape == (batch, seq, hid)
    # bf16 MXU operands with f32 accumulation -> loose tolerance vs f32 ref.
    assert jnp.allclose(out, ref, atol=2e-2, rtol=2e-2), float(
        jnp.max(jnp.abs(out - ref)))

    # training=True with drop_rate=0.0 must match eval exactly (dropout disabled).
    out_tr0 = ffn_pallas(x, w1, b1, w2, b2, training=True, drop_rate=0.0)
    out_tr0 = jax.block_until_ready(out_tr0)
    assert jnp.allclose(out_tr0, out)

    # Training-mode smoke test with active dropout (in-kernel hash PRNG).
    out_tr = ffn_pallas(x, w1, b1, w2, b2, training=True, drop_rate=0.1, seed=7)
    out_tr = jax.block_until_ready(out_tr)
    assert out_tr.shape == (batch, seq, hid)
    assert bool(jnp.all(jnp.isfinite(out_tr)))

    print("KERNEL_OK")
</pallas_src>

<mosaic_0001>
module attributes {stable_mosaic.version = 11 : i64} {
  func.func @_ffn_kernel(%arg0: i32, %arg1: i32, %arg2: memref<1xi32, #tpu.memory_space<smem>>, %arg3: memref<8x32xf32, #tpu.memory_space<vmem>>, %arg4: memref<32x32xbf16, #tpu.memory_space<vmem>>, %arg5: memref<1x32xf32, #tpu.memory_space<vmem>>, %arg6: memref<32x32xbf16, #tpu.memory_space<vmem>>, %arg7: memref<1x32xf32, #tpu.memory_space<vmem>>, %arg8: memref<8x32xf32, #tpu.memory_space<vmem>>, %arg9: memref<8x32xf32, #tpu.memory_space<vmem>>) attributes {dimension_semantics = [#tpu.dimension_semantics<parallel>, #tpu.dimension_semantics<arbitrary>], iteration_bounds = array<i64: 2, 1>, scalar_prefetch = 1 : i64, scratch_operands = 1 : i64, tpu.core_type = #tpu.core_type<tc>, window_params = [{transform_indices = @transform_0, window_bounds = array<i64: 8, 32>}, {pipeline_mode = #tpu.pipeline_mode<synchronous>, transform_indices = @transform_1, window_bounds = array<i64: 32, 32>}, {pipeline_mode = #tpu.pipeline_mode<synchronous>, transform_indices = @transform_2, window_bounds = array<i64: 1, 32>}, {pipeline_mode = #tpu.pipeline_mode<synchronous>, transform_indices = @transform_3, window_bounds = array<i64: 32, 32>}, {pipeline_mode = #tpu.pipeline_mode<synchronous>, transform_indices = @transform_4, window_bounds = array<i64: 1, 32>}, {transform_indices = @transform_5, window_bounds = array<i64: 8, 32>}]} {
    %c0_i32 = arith.constant 0 : i32
    %0 = arith.cmpi eq, %arg1, %c0_i32 : i32
    %1 = arith.extui %0 : i1 to i32
    %c0_i32_0 = arith.constant 0 : i32
    %2 = arith.cmpi ne, %1, %c0_i32_0 : i32
    scf.if %2 {
      %cst_17 = arith.constant 0.000000e+00 : f32
      %24 = vector.broadcast %cst_17 : f32 to vector<8x32xf32>
      %c0_18 = arith.constant 0 : index
      %c0_19 = arith.constant 0 : index
      %25 = vector.load %arg9[%c0_18, %c0_19] : memref<8x32xf32, #tpu.memory_space<vmem>>, vector<8x32xf32>
      tpu.vector_store %arg9[%c0_18, %c0_19], %24 {strides = array<i32>} : memref<8x32xf32, #tpu.memory_space<vmem>>, vector<8x32xf32>,
    } else {
    }
    %c0 = arith.constant 0 : index
    %c0_1 = arith.constant 0 : index
    %3 = vector.load %arg3[%c0, %c0_1] : memref<8x32xf32, #tpu.memory_space<vmem>>, vector<8x32xf32>
    %4 = arith.truncf %3 : vector<8x32xf32> to vector<8x32xbf16>
    %c0_2 = arith.constant 0 : index
    %c0_3 = arith.constant 0 : index
    %5 = vector.load %arg4[%c0_2, %c0_3] : memref<32x32xbf16, #tpu.memory_space<vmem>>, vector<32x32xbf16>
    %cst = arith.constant dense<0.000000e+00> : vector<8x32xf32>
    %6 = tpu.matmul %4, %5, %cst {dimension_numbers = #tpu.dot_dimension_numbers<[1], [0], [0], [1], [0, 0, 1, 1], [], []>} : vector<8x32xbf16>, vector<32x32xbf16>, vector<8x32xf32> -> vector<8x32xf32>
    %c0_4 = arith.constant 0 : index
    %c0_5 = arith.constant 0 : index
    %7 = vector.load %arg5[%c0_4, %c0_5] : memref<1x32xf32, #tpu.memory_space<vmem>>, vector<1x32xf32>
    %8 = vector.broadcast %7 : vector<1x32xf32> to vector<8x32xf32>
    %9 = arith.addf %6, %8 : vector<8x32xf32>
    %cst_6 = arith.constant 0.000000e+00 : f32
    %10 = vector.broadcast %cst_6 : f32 to vector<8x32xf32>
    %11 = arith.cmpf ogt, %9, %10 : vector<8x32xf32>
    %cst_7 = arith.constant 0.00999999977 : f32
    %12 = vector.broadcast %cst_7 : f32 to vector<8x32xf32>
    %13 = arith.mulf %12, %9 : vector<8x32xf32>
    %14 = arith.select %11, %9, %13 : vector<8x32xi1>, vector<8x32xf32>
    %c0_8 = arith.constant 0 : index
    %c0_9 = arith.constant 0 : index
    %15 = vector.load %arg9[%c0_8, %c0_9] : memref<8x32xf32, #tpu.memory_space<vmem>>, vector<8x32xf32>
    %16 = arith.truncf %14 : vector<8x32xf32> to vector<8x32xbf16>
    %c0_10 = arith.constant 0 : index
    %c0_11 = arith.constant 0 : index
    %17 = vector.load %arg6[%c0_10, %c0_11] : memref<32x32xbf16, #tpu.memory_space<vmem>>, vector<32x32xbf16>
    %cst_12 = arith.constant dense<0.000000e+00> : vector<8x32xf32>
    %18 = tpu.matmul %16, %17, %cst_12 {dimension_numbers = #tpu.dot_dimension_numbers<[1], [0], [0], [1], [0, 0, 1, 1], [], []>} : vector<8x32xbf16>, vector<32x32xbf16>, vector<8x32xf32> -> vector<8x32xf32>
    %19 = arith.addf %15, %18 : vector<8x32xf32>
    %c0_13 = arith.constant 0 : index
    %c0_14 = arith.constant 0 : index
    %20 = vector.load %arg9[%c0_13, %c0_14] : memref<8x32xf32, #tpu.memory_space<vmem>>, vector<8x32xf32>
    tpu.vector_store %arg9[%c0_13, %c0_14], %19 {strides = array<i32>} : memref<8x32xf32, #tpu.memory_space<vmem>>, vector<8x32xf32>,
    %c0_i32_15 = arith.constant 0 : i32
    %21 = arith.cmpi eq, %arg1, %c0_i32_15 : i32
    %22 = arith.extui %21 : i1 to i32
    %c0_i32_16 = arith.constant 0 : i32
    %23 = arith.cmpi ne, %22, %c0_i32_16 : i32
    scf.if %23 {
      %c0_17 = arith.constant 0 : index
      %c0_18 = arith.constant 0 : index
      %24 = vector.load %arg9[%c0_17, %c0_18] : memref<8x32xf32, #tpu.memory_space<vmem>>, vector<8x32xf32>
      %c0_19 = arith.constant 0 : index
      %c0_20 = arith.constant 0 : index
      %25 = vector.load %arg7[%c0_19, %c0_20] : memref<1x32xf32, #tpu.memory_space<vmem>>, vector<1x32xf32>
      %26 = vector.broadcast %25 : vector<1x32xf32> to vector<8x32xf32>
      %27 = arith.addf %24, %26 : vector<8x32xf32>
      %c0_21 = arith.constant 0 : index
      %c0_22 = arith.constant 0 : index
      %28 = vector.load %arg8[%c0_21, %c0_22] : memref<8x32xf32, #tpu.memory_space<vmem>>, vector<8x32xf32>
      tpu.vector_store %arg8[%c0_21, %c0_22], %27 {strides = array<i32>} : memref<8x32xf32, #tpu.memory_space<vmem>>, vector<8x32xf32>,
    } else {
    }
    return
  }
  func.func @transform_0(%arg0: i32, %arg1: i32, %arg2: memref<1xi32, #tpu.memory_space<smem>>) -> (i32, i32) {
    %c0_i32 = arith.constant 0 : i32
    %c0_i32_0 = arith.constant 0 : i32
    return %arg0, %c0_i32 : i32, i32
  }
  func.func @transform_1(%arg0: i32, %arg1: i32, %arg2: memref<1xi32, #tpu.memory_space<smem>>) -> (i32, i32) {
    %c0_i32 = arith.constant 0 : i32
    %c0_i32_0 = arith.constant 0 : i32
    return %c0_i32, %arg1 : i32, i32
  }
  func.func @transform_2(%arg0: i32, %arg1: i32, %arg2: memref<1xi32, #tpu.memory_space<smem>>) -> (i32, i32) {
    %c0_i32 = arith.constant 0 : i32
    %c0_i32_0 = arith.constant 0 : i32
    return %c0_i32, %arg1 : i32, i32
  }
  func.func @transform_3(%arg0: i32, %arg1: i32, %arg2: memref<1xi32, #tpu.memory_space<smem>>) -> (i32, i32) {
    %c0_i32 = arith.constant 0 : i32
    %c0_i32_0 = arith.constant 0 : i32
    return %arg1, %c0_i32 : i32, i32
  }
  func.func @transform_4(%arg0: i32, %arg1: i32, %arg2: memref<1xi32, #tpu.memory_space<smem>>) -> (i32, i32) {
    %c0_i32 = arith.constant 0 : i32
    %c0_i32_0 = arith.constant 0 : i32
    %c0_i32_1 = arith.constant 0 : i32
    return %c0_i32, %c0_i32_0 : i32, i32
  }
  func.func @transform_5(%arg0: i32, %arg1: i32, %arg2: memref<1xi32, #tpu.memory_space<smem>>) -> (i32, i32) {
    %c0_i32 = arith.constant 0 : i32
    %c0_i32_0 = arith.constant 0 : i32
    return %arg0, %c0_i32 : i32, i32
  }
}

</mosaic_0001>

<bundles_post_ra>
// kernel: tpu_custom_call.1
= control target key start
LH: loop header
LB: loop body
LE: loop exit
PB: predicated region body
PF: predicated region fallthrough
CT: control target
= control target key end

     0   :  { %12 = vsyncpa [#allocation6], 0  ;;  %s1216_s0 = inlined_call_operand.<no memory space> [shape: s32[1], index: 0, kind: input, shape index: {}]   ;;  %s1217_s1 = inlined_call_operand.hbm [shape: f32[16,32], index: 1, kind: input, shape index: {}]   ;;  %s1218_s2 = inlined_call_operand.hbm [shape: bf16[32,32], index: 2, kind: input, shape index: {}]   ;;  %s1219_s3 = inlined_call_operand.vmem [shape: f32[1,32], index: 3, kind: input, shape index: {}]   ;;  %s1220_s4 = inlined_call_operand.hbm [shape: bf16[32,32], index: 4, kind: input, shape index: {}]   ;;  %s1221_s5 = inlined_call_operand.vmem [shape: f32[1,32], index: 5, kind: input, shape index: {}]   ;;  %s1222_s6 = inlined_call_operand.hbm [shape: f32[16,32], index: 6, kind: output, shape index: {}]  }
   0x1   :  { %14 = vsyncpa [#allocation6 + $0x1], 0 }
   0x2   :  { %15 = vsyncpa [#allocation9], 0 }
   0x3   :  { %16 = vsyncpa [#allocation7], 0 }
   0x4   :  { %18 = vsyncpa [#allocation7 + $0x1], 0  ;;  %s951_s0 = smov 0   ;;  %s953_s21 = smov 0  }
   0x5   :  { %s955_s22 = smov 0   ;;  %s957_s23 = smov 0  }
   0x6   :  { %s959_s24 = smov 0   ;;  %s961_s25 = smov 0  }
   0x7 LB: > { %s595_s26 = sadd.s32 4294967295, %s906_s25   ;;  %s596_s27 = sadd.s32 4294967294, %s906_s25   ;;  %s906_s25 = sphi %s961_s25, %s24_s25   ;;  %s902_s24 = sphi %s959_s24, %s1244_s24   ;;  %s898_s23 = sphi %s957_s23, %s1243_s23   ;;  %s894_s22 = sphi %s955_s22, %s1242_s22   ;;  %s890_s21 = sphi %s953_s21, %s1241_s21   ;;  %s886_s0 = sphi %s951_s0, %s1240_s0  }
   0x8   : > { %p56_p0 = scmp.ne.s32.totalorder %s890_s21, %s886_s0  ;;  %p985_p1 = scmp.eq.s32.totalorder %s595_s26, 0 }
   0x9   : > { %p989_p2 = scmp.eq.s32.totalorder %s595_s26, 1  ;;  %p185_p3 = scmp.eq.s32.totalorder %s596_s27, 1 }
   0xa   : > { %s1227_s28 = scalar_select %p985_p1, 1, 0 }
   0xb   : > { %p995_p4 = por %p985_p1, %p56_p0  ;;  %p597_p5 = scmp.ge.s32.totalorder %s906_s25, 1 }
   0xc   : > { %p1000_p6 = por %p185_p3, %p56_p0  ;;  %p192_p7 = scmp.lt.s32.totalorder %s906_s25, 3 }
   0xd   : > { %s1229_s30 = scalar_select %p995_p4, 1, 0 }
   0xe   : > { %s1230_s7 = scalar_select %p1000_p6, 1, 0 }
   0xf   : > { %p1005_p8 = pnand %p597_p5, %p192_p7  ;;  %s908_s9 = smov [#allocation8]  }
  0x10   : > { %s206_s10 = sshll.u32 %s908_s9, 4  ;;  %s909_s12 = smov [#allocation10]   ;;  %s1009_s10 = int_to_ptr.vmem [resolvable:$true] %s206_s10 }
  0x11   : > { %p655_p9 = pneg %p1005_p8  ;;  %s228_s13 = sshll.u32 %s909_s12, 4  ;;  %s1020_s13 = int_to_ptr.vmem [resolvable:$true] %s228_s13 }
  0x12   : > { %s734_s16 = scalar_lea.hbm %s1218_s2, 256 }
  0x13   : > { %p1016_p11 = pnand %p655_p9, %p985_p1  ;;  %p735_p12 = scmp.ne.s32.totalorder %s1218_s2, %s734_s16 }
  0x14   : > { %p741_p5 = scmp.lt.u32.totalorder %s734_s16, %s1218_s2 }
  0x15   : > { %p736_p13 = pneg %p1016_p11 }
  0x17   : > { %p737_p0 = pnand %p736_p13, %p735_p12 }
  0x19   : > { %p738_p3 = pneg %p737_p0 }
  0x1b   : > { %p743_p7 = pnand %p741_p5, %p738_p3 }
  0x1d   : > { %746 = shalt.err (!%p743_p7)
}
  0x1e   : > { %s747_s26 = scalar_lea.vmem %s1009_s10, 256  ;;  %p755_p1 = scmp.lt.s32.totalorder %s1009_s10, %s1009_s10 }
  0x1f   : > { %p748_p9 = scmp.ne.s32.totalorder %s1009_s10, %s747_s26  ;;  %p756_p12 = scmp.lt.s32.totalorder %s747_s26, %s747_s26 }
  0x21   : > { %p750_p10 = pnand %p748_p9, %p736_p13  ;;  %p757_p0 = por %p756_p12, %p755_p1 }
  0x23   : > { %p751_p6 = pneg %p750_p10 }
  0x25   : > { %p758_p4 = pnand %p757_p0, %p751_p6 }
  0x27   : > { %761 = shalt.err (!%p758_p4)
}
  0x28   : > { %s910_s27 = smov 64   ;;  %s911_s9 = smov 4  }
  0x29   : > { %658 = dma.hbm_to_vmem [thread:$0]  (!%p1016_p11), %s1218_s2, 256, %s1009_s10, [#allocation9], %s910_s27, %s910_s27, %s911_s9  }
  0x2a   : > { %s762_s17 = scalar_lea.hbm %s1220_s4, 256 }
  0x2b   : > { %p763_p1 = scmp.ne.s32.totalorder %s1220_s4, %s762_s17  ;;  %p769_p10 = scmp.lt.u32.totalorder %s762_s17, %s1220_s4 }
  0x2d   : > { %p765_p4 = pnand %p763_p1, %p736_p13 }
  0x2f   : > { %p766_p6 = pneg %p765_p4 }
  0x31   : > { %p771_p3 = pnand %p769_p10, %p766_p6 }
  0x33   : > { %774 = shalt.err (!%p771_p3)
}
  0x34   : > { %s775_s10 = scalar_lea.vmem %s1020_s13, 256  ;;  %p783_p12 = scmp.lt.s32.totalorder %s1020_s13, %s1020_s13 }
  0x35   : > { %p776_p5 = scmp.ne.s32.totalorder %s1020_s13, %s775_s10  ;;  %p784_p0 = scmp.lt.s32.totalorder %s775_s10, %s775_s10 }
  0x37   : > { %p778_p7 = pnand %p776_p5, %p736_p13  ;;  %p785_p1 = por %p784_p0, %p783_p12 }
  0x39   : > { %p779_p9 = pneg %p778_p7 }
  0x3b   : > { %p786_p4 = pnand %p785_p1, %p779_p9 }
  0x3d   : > { %789 = shalt.err (!%p786_p4)
}
  0x3e   : > { %661 = dma.hbm_to_vmem [thread:$0]  (!%p1016_p11), %s1220_s4, 256, %s1020_s13, [#allocation9], %s910_s27, %s910_s27, %s911_s9  }
  0x3f   : > { %s36_s15 = sadd.s32 1, %s902_s24  ;;  %s43_s16 = sadd.s32 1, %s894_s22 }
  0x40   : > { %p38_p13 = scmp.ge.s32.totalorder %s36_s15, 2  ;;  %p50_p6 = scmp.ne.s32.totalorder %s894_s22, %s890_s21 }
  0x41   : > { %p51_p10 = scmp.eq.s32.totalorder %s906_s25, 0  ;;  %p672_p3 = scmp.lt.s32.totalorder %s906_s25, 2 }
  0x42   : > { %s1246_s15 = smov (%p38_p13, %s36_s15), 0  ;;  %p1084_p7 = por %p989_p2, %p50_p6 }
  0x43   : > { %p52_p5 = por %p51_p10, %p50_p6  ;;  %s40_s17 = ssub.s32 %s902_s24, %s1246_s15 }
  0x44   : > { %s1233_s11 = scalar_select %p1084_p7, 1, 0 }
  0x45   : > { %s245_s18 = sand.u32 1, %s894_s22   ;;  %p41_p9 = scmp.eq.s32.totalorder %s40_s17, 0 }
  0x46   : > { %s602_s13 = sshll.u32 %s245_s18, 3  ;;  %s603_s27 = sshll.u32 %s902_s24, 7 }
  0x47   : > { %s1093_s9 = scalar_select %p41_p9, %s894_s22, %s43_s16  }
  0x48   : > { %s1098_s26 = scalar_lea.hbm %s1217_s1, %s603_s27  ;;  %s249_s29 = scalar_lea.vmem [#allocation5], %s602_s13 }
  0x49   : > { %s256_s10 = sshll.u32 %s249_s29, 4  ;;  %p1102_p2 = pnand %p672_p3, %p52_p5  ;;  %s1106_s10 = int_to_ptr.vmem [resolvable:$true] %s256_s10 }
  0x4a   : > { %s246_s14 = scalar_lea.sflag [#allocation6], %s245_s18  ;;  %s790_s16 = scalar_lea.hbm %s1098_s26, 128 }
  0x4b   : > { %p791_p11 = scmp.ne.s32.totalorder %s1098_s26, %s790_s16  ;;  %p792_p12 = pneg %p1102_p2 }
  0x4c   : > { %s795_s27 = scalar_lea.hbm %s1217_s1, 256  ;;  %p796_p4 = scmp.lt.u32.totalorder %s1098_s26, %s1217_s1 }
  0x4d   : > { %p793_p0 = pnand %p792_p12, %p791_p11  ;;  %p797_p13 = scmp.lt.u32.totalorder %s795_s27, %s790_s16 }
  0x4e   : > { %p799_p10 = scmp.lt.u32.totalorder %s790_s16, %s1098_s26 }
  0x4f   : > { %p794_p1 = pneg %p793_p0  ;;  %p798_p6 = por %p797_p13, %p796_p4 }
  0x51   : > { %p800_p3 = por %p799_p10, %p798_p6 }
  0x53   : > { %p801_p5 = pnand %p800_p3, %p794_p1 }
  0x55   : > { %804 = shalt.err (!%p801_p5)
}
  0x56   : > { %s805_s18 = scalar_lea.vmem %s1106_s10, 128  ;;  %s912_s29 = smov [#allocation5]  }
  0x57   : > { %p806_p9 = scmp.ne.s32.totalorder %s1106_s10, %s805_s18  ;;  %s810_s17 = sshll.u32 %s912_s29, 4  ;;  %s811_s17 = int_to_ptr.vmem [resolvable:$false] %s810_s17 }
  0x58   : > { %s812_s13 = scalar_lea.vmem %s811_s17, 256  ;;  %p813_p7 = scmp.lt.s32.totalorder %s1106_s10, %s811_s17 }
  0x59   : > { %p808_p11 = pnand %p806_p9, %p792_p12  ;;  %p814_p4 = scmp.lt.s32.totalorder %s812_s13, %s805_s18 }
  0x5b   : > { %p809_p0 = pneg %p808_p11  ;;  %p815_p13 = por %p814_p4, %p813_p7 }
  0x5d   : > { %p816_p6 = pnand %p815_p13, %p809_p0 }
  0x5f   : > { %819 = shalt.err (!%p816_p6)
}
  0x60   : > { %665 = dma.hbm_to_vmem [thread:$0]  (!%p1102_p2), %s1098_s26, 128, %s1106_s10, %s246_s14  }
  0x61   : > { %265 = sbr.rel (%p1005_p8) target bundleno = 575 (0x23f), region = 40  ;;  %s1136_s16 = sand.u32 (!%p1005_p8), 1, %s890_s21  }
  0x62   : > { %s605_s27 = sshll.u32 (!%p1005_p8), %s1136_s16, 3  ;;  %s268_s19 = scalar_lea.sflag (!%p1005_p8), [#allocation6], %s1136_s16 }
  0x63   : > { %s271_s20 = scalar_lea.vmem (!%p1005_p8), [#allocation5], %s605_s27  ;;  %p1235_p7 = scmp.ne.s32.totalorder (!%p1005_p8), %s1229_s30, 0 }
  0x68   : > { %873 = dma.done.wait (%p1235_p7), %s268_s19, 128  }
  0x69   : > { %875 = vsyncadd (%p1235_p7), %s268_s19, 4294967168  ;;  %p1236_p2 = scmp.ne.s32.totalorder %s1227_s28, 0 }
  0x6b   : > { %877 = dma.done.wait (%p1236_p2), [#allocation9], 512  }
  0x6c   : > { %879 = vsyncadd (%p1236_p2), [#allocation9], 4294966784  ;;  %vm318_vm0 = vcmask 261120   ;;  %v913_v0 = vmov 0.0   ;;  %vm914_vm1 = vmmov 0   ;;  %v730_v1 = vld [vmem:[#allocation8] sm:$0xff]  }
  0x6d   : > { %627 = vmatprep.subr.bf16.mxu0 %v913_v0  ;;  %631 = vmatprep.mubr.msk.bf16.mxu0 %vm914_vm1, %v913_v0  ;;  %319 = vst.msk [vmem:[#allocation2] sm:$0xff] %vm318_vm0, %v913_v0  ;;  %v731_v2 = vld [vmem:[#allocation8 + $0x8] sm:$0xff]   ;;  %v320_v3 = vld [vmem:[%s271_s20] sm:$0xff]  ;;  %s618_s10 = sshll.u32 %s898_s23, 7  ;;  %s308_s12 = scalar_lea.vmem [#allocation11], %s605_s27 }
  0x6e   : > { %635 = vmatprep.subr.bf16.mxu1 %v913_v0  ;;  %639 = vmatprep.mubr.msk.bf16.mxu1 %vm914_vm1, %v913_v0  ;;  %v321_v4 = vpack.c.bf16 %v320_v3, %v320_v3  ;;  %v732_v5 = vld [vmem:[#allocation10] sm:$0xff]   ;;  %v733_v6 = vld [vmem:[#allocation10 + $0x8] sm:$0xff]   ;;  %v609_v7 = vld [vmem:[%s1219_s3] ss:$0 sm:$0xff]  ;;  %s482_s14 = sshll.u32 %s308_s12, 4  ;;  %s1166_s17 = scalar_lea.hbm %s1222_s6, %s618_s10  ;;  %s1168_s14 = int_to_ptr.vmem [resolvable:$true] %s482_s14 }
  0x6f   : > { %628 = vmatpush3.bf16.msra.mxu0 %v730_v1  ;;  %636 = vmatpush3.bf16.msra.mxu1 %v732_v5  ;;  %v616_v22 = vld [vmem:[%s1221_s5] ss:$0 sm:$0xff]  ;;  %s469_s13 = scalar_lea.sflag [#allocation7], %s1136_s16  ;;  %s820_s19 = scalar_lea.vmem %s1168_s14, 128 }
  0x70   : > { %629 = vmatprep.subr.bf16.mxu0 %v913_v0  ;;  %637 = vmatprep.subr.bf16.mxu1 %v913_v0  ;;  %p821_p8 = scmp.ne.s32.totalorder %s1168_s14, %s820_s19  ;;  %p1237_p12 = scmp.ne.s32.totalorder %s1233_s11, 0 }
  0x71   : > { %s915_s23 = smov [#allocation11]  }
  0x72   : > { %p822_p1 = pnand %p821_p8, %p1237_p12  ;;  %s824_s27 = sshll.u32 %s915_s23, 4  ;;  %s825_s27 = int_to_ptr.vmem [resolvable:$false] %s824_s27 }
  0x73   : > { %630 = vmatpush3.bf16.msra.mxu0 %v731_v2  ;;  %638 = vmatpush3.bf16.msra.mxu1 %v733_v6  ;;  %s826_s20 = scalar_lea.vmem %s825_s27, 256  ;;  %p827_p3 = scmp.lt.s32.totalorder %s1168_s14, %s825_s27 }
  0x74   : > { %v392_v16 = vld [vmem:[#allocation2] sm:$0xff]  ;;  %p823_p10 = pneg %p822_p1  ;;  %p828_p5 = scmp.lt.s32.totalorder %s826_s20, %s820_s19 }
  0x76   : > { %632 = vmatmul.mubr.msk.bf16.vlgmr.msra.gmra.mrb[0].mxu0 %vm318_vm0, %v321_v4  ;;  %p829_p9 = por %p828_p5, %p827_p3 }
  0x78   : > { %p830_p11 = pnand %p829_p9, %p823_p10 }
 0x149   : > { %v383_v8 = vpop.f32.mrb[0].mxu0 }
 0x14a   : > { %v384_v9 = vadd.f32 %v609_v7, %v383_v8  ;;  %v633_v10 = vpop.f32.mrb[1].mxu0 }
 0x14b   : > { %v386_v11 = vpop.f32.mrb[2].mxu0 }
 0x14c   : > { %vm389_vm2 = vcmp.gt.f32.partialorder %v384_v9, 0.0  ;;  %v390_v12 = vmul.f32 0.01, %v384_v9  ;;  %v634_v13 = vpop.f32.mrb[3].mxu0 }
 0x14e   : > { %v391_v14 = vsel %vm389_vm2, %v384_v9, %v390_v12 }
 0x14f   : > { %v393_v15 = vpack.c.bf16 %v391_v14, %v391_v14 }
 0x151   : > { %640 = vmatmul.mubr.msk.bf16.vlgmr.msra.gmra.mrb[0].mxu1 %vm318_vm0, %v393_v15 }
 0x224   : > { %v447_v17 = vpop.f32.mrb[0].mxu1 }
 0x225   : > { %v453_v18 = vadd.f32 %v447_v17, %v392_v16  ;;  %v641_v19 = vpop.f32.mrb[1].mxu1 }
 0x226   : > { %v450_v20 = vpop.f32.mrb[2].mxu1 }
 0x227   : > { %454 = vst.msk [vmem:[#allocation2] sm:$0xff] %vm318_vm0, %v453_v18  ;;  %v642_v21 = vpop.f32.mrb[3].mxu1 }
 0x22e   : > { %v458_v23 = vld [vmem:[#allocation2] sm:$0xff] }
 0x22f   : > { %v466_v24 = vadd.f32 %v616_v22, %v458_v23 }
 0x231   : > { %467 = vst.msk [vmem:[%s308_s12] sm:$0xff] %vm318_vm0, %v466_v24 }
 0x232   : > { %833 = shalt.err (!%p830_p11)
}
 0x233   : > { %s834_s16 = scalar_lea.hbm %s1166_s17, 128  ;;  %s838_s8 = scalar_lea.hbm %s1222_s6, 256 }
 0x234   : > { %p835_p0 = scmp.ne.s32.totalorder %s1166_s17, %s834_s16  ;;  %p839_p6 = scmp.lt.u32.totalorder %s1166_s17, %s1222_s6 }
 0x235   : > { %p840_p7 = scmp.lt.u32.totalorder %s838_s8, %s834_s16  ;;  %p842_p8 = scmp.lt.u32.totalorder %s834_s16, %s1166_s17 }
 0x236   : > { %p836_p4 = pnand %p835_p0, %p1237_p12 }
 0x237   : > { %p841_p2 = por %p840_p7, %p839_p6 }
 0x238   : > { %p837_p13 = pneg %p836_p4 }
 0x239   : > { %p843_p1 = por %p842_p8, %p841_p2 }
 0x23b   : > { %p844_p10 = pnand %p843_p1, %p837_p13 }
 0x23d   : > { %847 = shalt.err (!%p844_p10)
}
 0x23e   : > { %653 = dma.vmem_to_hbm [thread:$0]  (%p1237_p12), %s1168_s14, 128, %s1166_s17, %s469_s13  }
 0x23f PF: > { %s494_s12 = sand.u32 1, %s886_s0   ;;  %p1238_p3 = scmp.ne.s32.totalorder %s1230_s7, 0 }
 0x240   : > { %p1239_p5 = scmp.ge.s32.totalorder %s906_s25, 2  ;;  %s495_s18 = scalar_lea.sflag [#allocation7], %s494_s12 }
 0x242   : > { %p667_p9 = pnand %p1239_p5, %p1238_p3 }
 0x244   : > { %881 = dma.done.wait (!%p667_p9), %s495_s18, 128  }
 0x245   : > { %883 = vsyncadd (!%p667_p9), %s495_s18, 4294967168  ;;  %s24_s25 = sadd.s32 1, %s906_s25   ;;  %s1240_s0 = smov %s890_s21 }
 0x246   : > { %p21_p11 = scmp.ge.s32.totalorder %s24_s25, 4   ;;  %s1241_s21 = smov %s894_s22 }
 0x247   : > { %s1242_s22 = smov %s1093_s9  ;;  %s1243_s23 = smov %s902_s24 }
 0x248   : > { %s1244_s24 = smov %s1246_s15  ;;  %23 = sbr.rel (!%p21_p11) target bundleno = 7 (0x7), region = 106 }
 0x24f   :  { %500 = vsyncpa [#allocation6], 1 }
 0x250   :  { %502 = vsyncpa [#allocation6 + $0x1], 1 }
 0x251   :  { %503 = vsyncpa [#allocation9], 1 }
 0x252   :  { %504 = vsyncpa [#allocation7], 1 }
 0x253   :  { %506 = vsyncpa [#allocation7 + $0x1], 1 }

</bundles_post_ra>
